<compile_context>
chip_gen: v7x
topology: tpu7x:2x2x1
jax: 0.10.0
libtpu: 0.0.40
codegen_flags: <defaults>
</compile_context>

<pallas_src>
import math

import jax
import jax.numpy as jnp
from jax.experimental import pallas as pl
from jax.experimental.pallas import tpu as pltpu


LANE = 128       # pad feature dims to multiples of the vreg lane width
SUBLANE = 8      # f32 sublane count (bf16 packs 16 rows / vreg)


def _round_up(n, m):
    return ((n + m - 1) // m) * m


# ---------------------------------------------------------------------------
# Kernel
# ---------------------------------------------------------------------------
def ae_kernel(x_ref,
              w1_ref, b1_ref,   # encoder Linear(D  -> H2)
              w2_ref, b2_ref,   # encoder Linear(H2 -> H3)
              w3_ref, b3_ref,   # decoder Linear(H3 -> H2)
              w4_ref, b4_ref,   # decoder Linear(H2 -> D)
              enc_ref, dec_ref):
    # bf16 MXU operands, f32 accumulation; bias add / ReLU in f32 (v5e-safe).
    x = x_ref[...].astype(jnp.bfloat16)

    h1 = jnp.dot(x, w1_ref[...], preferred_element_type=jnp.float32) + b1_ref[...]
    h1 = jnp.maximum(h1, 0.0)

    enc = jnp.dot(h1.astype(jnp.bfloat16), w2_ref[...],
                  preferred_element_type=jnp.float32) + b2_ref[...]
    enc_ref[...] = enc.astype(enc_ref.dtype)          # lane-dense full store

    d1 = jnp.dot(jnp.maximum(enc, 0.0).astype(jnp.bfloat16), w3_ref[...],
                 preferred_element_type=jnp.float32) + b3_ref[...]
    d1 = jnp.maximum(d1, 0.0)

    dec = jnp.dot(d1.astype(jnp.bfloat16), w4_ref[...],
                  preferred_element_type=jnp.float32) + b4_ref[...]
    dec_ref[...] = dec.astype(dec_ref.dtype)          # lane-dense full store


# ---------------------------------------------------------------------------
# VMEM planning (generation-aware)
# ---------------------------------------------------------------------------
def _vmem_plan():
    """(budget_bytes, vmem_limit_bytes, max_tile_b) per TPU generation."""
    try:
        cap = pltpu.get_tpu_info().vmem_capacity_bytes
    except Exception:
        cap = 64 * 1024 * 1024            # unknown -> assume smallest (v7x-safe)
    if cap >= 96 * 1024 * 1024:           # v5e / v6e: 128 MiB VMEM
        return 80 * 1024 * 1024, 100 * 1024 * 1024, 1024
    # v7x: 64 MiB per TensorCore; weights duplicated per core under "parallel"
    return 28 * 1024 * 1024, 48 * 1024 * 1024, 512


def _pick_tile_b(B, Dp, H2p, H3p, x_bytes, weights_vmem_bytes,
                 budget_bytes, max_tile):
    """Largest batch tile that fits the per-generation VMEM budget,
    conservatively counting every live per-row temporary."""
    # bf16 arrays pack 16 rows / vreg: use 16-row granularity unless B is tiny.
    g = 16 if _round_up(B, SUBLANE) >= 16 else SUBLANE

    per_row = 2 * Dp * x_bytes                  # streamed x tile (2 buffers)
    per_row += 2 * (H3p + Dp) * 2               # bf16 enc/dec out tiles (2 buffers)
    per_row += (2 * H2p + 2 * H3p + Dp) * 4     # f32 temps: h1, enc, relu(enc), d1, dec
    per_row += (Dp + 2 * H2p + H3p) * 2         # bf16 casts of x, h1, relu(enc), d1

    avail = max(budget_bytes - weights_vmem_bytes, per_row * g)
    t = min(max_tile, avail // per_row)
    if B > g:
        # keep >= 2 batch tiles so both v7x TensorCores get work
        t = min(t, _round_up(pl.cdiv(B, 2), g))
    t = min(t, _round_up(B, g))
    return max(g, (int(t) // g) * g)


# ---------------------------------------------------------------------------
# Single-buffering probe for the resident weight blocks
# ---------------------------------------------------------------------------
_BUFFERED_SINGLE = None


def _single_buffer_supported():
    """One-time probe: can constant-index blocks use pipeline_mode=Buffered(1)?
    Falls back to default double-buffering (correct, just more VMEM) if not."""
    global _BUFFERED_SINGLE
    if _BUFFERED_SINGLE is not None:
        return _BUFFERED_SINGLE

    def _probe_kernel(x_ref, o_ref):
        o_ref[...] = x_ref[...] + 1.0

    try:
        probe = pl.pallas_call(
            _probe_kernel,
            out_shape=jax.ShapeDtypeStruct((SUBLANE, LANE), jnp.float32),
            grid=(2,),
            in_specs=[pl.BlockSpec((SUBLANE, LANE), lambda i: (0, 0),
                                   pipeline_mode=pl.Buffered(1))],
            out_specs=pl.BlockSpec((SUBLANE, LANE), lambda i: (0, 0)),
        )
        jax.jit(probe).lower(jnp.zeros((SUBLANE, LANE), jnp.float32)).compile()
        _BUFFERED_SINGLE = True
    except Exception:
        _BUFFERED_SINGLE = False
    return _BUFFERED_SINGLE


# ---------------------------------------------------------------------------
# Param preparation (hoisted out of the per-call path) + forward
# ---------------------------------------------------------------------------
def prepare_params(params):
    """Pad feature dims to lane multiples and cast weights to bf16 ONCE."""
    w1, b1, w2, b2, w3, b3, w4, b4 = params
    D, H2 = w1.shape
    H3 = w2.shape[1]
    Dp, H2p, H3p = _round_up(D, LANE), _round_up(H2, LANE), _round_up(H3, LANE)

    def pad_w(w, rp, cp):
        return jnp.zeros((rp, cp), jnp.bfloat16).at[:w.shape[0], :w.shape[1]].set(
            w.astype(jnp.bfloat16))

    def pad_b(b, cp):
        return jnp.zeros((1, cp), jnp.float32).at[:, :b.shape[1]].set(
            b.astype(jnp.float32))

    padded = (pad_w(w1, Dp, H2p), pad_b(b1, H2p),
              pad_w(w2, H2p, H3p), pad_b(b2, H3p),
              pad_w(w3, H3p, H2p), pad_b(b3, H2p),
              pad_w(w4, H2p, Dp), pad_b(b4, Dp))
    dims = (D, H2, H3, Dp, H2p, H3p)
    return padded, dims


def ae_forward_prepared(x, padded_params, dims):
    """Fused AE forward on pre-padded bf16 weights.  Batch-gridded, weights
    VMEM-resident (single-buffered when supported), bf16 outputs."""
    D, H2, H3, Dp, H2p, H3p = dims
    B = x.shape[0]
    assert x.shape[1] == D, "input feature dim mismatch"

    w1p, b1p, w2p, b2p, w3p, b3p, w4p, b4p = padded_params

    weight_hbm_bytes = (w1p.size + w2p.size + w3p.size + w4p.size) * 2 \
        + (b1p.size + b2p.size + b3p.size + b4p.size) * 4
    single_buf = _single_buffer_supported()
    weights_vmem_bytes = weight_hbm_bytes * (1 if single_buf else 2)

    budget, vmem_limit, max_tile = _vmem_plan()

    pad_feat = (Dp != D)
    x_bytes = 2 if pad_feat else x.dtype.itemsize
    tile_b = _pick_tile_b(B, Dp, H2p, H3p, x_bytes, weights_vmem_bytes,
                          budget, max_tile)
    Bp = _round_up(B, tile_b)
    pad_batch = (Bp != B)

    if pad_feat or pad_batch:
        # Single fused pad+cast pass, only when padding is actually required.
        # Zero padding propagates exactly through zero weight rows/cols.
        x_in = jnp.zeros((Bp, Dp), jnp.bfloat16).at[:B, :D].set(
            x.astype(jnp.bfloat16))
    else:
        x_in = x   # no wrapper copy: kernel reads x directly and casts in VMEM

    grid = (Bp // tile_b,)
    tile = lambda i: (i, 0)     # batch-tiled arrays
    const = lambda i: (0, 0)    # weights/biases stay resident across the grid

    if single_buf:
        def const_spec(shape):
            return pl.BlockSpec(shape, const, pipeline_mode=pl.Buffered(1))
    else:
        def const_spec(shape):
            return pl.BlockSpec(shape, const)

    flops = 2 * Bp * (Dp * H2p + H2p * H3p + H3p * H2p + H2p * Dp)
    bytes_accessed = (x_in.size * x_in.dtype.itemsize
                      + weight_hbm_bytes
                      + Bp * H3p * 2 + Bp * Dp * 2)   # bf16 outputs

    enc_p, dec_p = pl.pallas_call(
        ae_kernel,
        out_shape=(
            jax.ShapeDtypeStruct((Bp, H3p), jnp.bfloat16),   # padded encode
            jax.ShapeDtypeStruct((Bp, Dp), jnp.bfloat16),    # padded decode
        ),
        grid=grid,
        in_specs=[
            pl.BlockSpec((tile_b, Dp), tile),
            const_spec((Dp, H2p)), const_spec((1, H2p)),
            const_spec((H2p, H3p)), const_spec((1, H3p)),
            const_spec((H3p, H2p)), const_spec((1, H2p)),
            const_spec((H2p, Dp)), const_spec((1, Dp)),
        ],
        out_specs=(
            pl.BlockSpec((tile_b, H3p), tile),
            pl.BlockSpec((tile_b, Dp), tile),
        ),
        compiler_params=pltpu.CompilerParams(
            dimension_semantics=("parallel",),   # megacore-shard the batch grid
            vmem_limit_bytes=vmem_limit,
        ),
        cost_estimate=pl.CostEstimate(
            flops=flops, transcendentals=0, bytes_accessed=bytes_accessed),
    )(x_in, w1p, b1p, w2p, b2p, w3p, b3p, w4p, b4p)

    if pad_feat or pad_batch:
        enc_p = enc_p[:B, :H3]
        dec_p = dec_p[:B, :D]
    return enc_p, dec_p


def make_ae_forward(params):
    """Prepare (pad + bf16-cast) the weights once, return a jitted forward over
    x.  Re-use the returned callable so the per-call path is just the kernel."""
    padded, dims = prepare_params(params)

    def fwd(x):
        return ae_forward_prepared(x, padded, dims)

    return jax.jit(fwd)


def ae_forward(x, params):
    """One-shot convenience wrapper (prefer make_ae_forward for repeated use)."""
    padded, dims = prepare_params(params)
    return ae_forward_prepared(x, padded, dims)


# ---------------------------------------------------------------------------
# Init + references
# ---------------------------------------------------------------------------
def init_params(key, input_dim):
    """nn.Linear-style init (uniform +/- 1/sqrt(fan_in)); weights stored as
    (in_features, out_features), biases as (1, out_features)."""
    p = 2 ** round(math.log2(input_dim))
    h2 = p // 2
    h3 = p // 4

    dims = [(input_dim, h2), (h2, h3), (h3, h2), (h2, input_dim)]
    params = []
    keys = jax.random.split(key, 2 * len(dims))
    for i, (fan_in, fan_out) in enumerate(dims):
        bound = 1.0 / math.sqrt(fan_in)
        w = jax.random.uniform(keys[2 * i], (fan_in, fan_out),
                               minval=-bound, maxval=bound, dtype=jnp.float32)
        b = jax.random.uniform(keys[2 * i + 1], (1, fan_out),
                               minval=-bound, maxval=bound, dtype=jnp.float32)
        params.extend([w, b])
    return tuple(params)


def ae_reference_f32(x, params):
    """Pure-JAX f32 reference (matches the PyTorch module exactly)."""
    w1, b1, w2, b2, w3, b3, w4, b4 = params
    h1 = jnp.maximum(x @ w1 + b1, 0.0)
    enc = h1 @ w2 + b2
    d1 = jnp.maximum(jnp.maximum(enc, 0.0) @ w3 + b3, 0.0)
    dec = d1 @ w4 + b4
    return enc, dec


def ae_reference_bf16(x, params):
    """Pure-JAX reference mimicking the kernel's bf16-operand / f32-accumulate dots."""
    w1, b1, w2, b2, w3, b3, w4, b4 = params
    bf = jnp.bfloat16

    def dot(a, w):
        return jnp.dot(a.astype(bf), w.astype(bf),
                       preferred_element_type=jnp.float32)

    h1 = jnp.maximum(dot(x, w1) + b1, 0.0)
    enc = dot(h1, w2) + b2
    d1 = jnp.maximum(dot(jnp.maximum(enc, 0.0), w3) + b3, 0.0)
    dec = dot(d1, w4) + b4
    return enc, dec


if __name__ == "__main__":
    input_dim = 32   # -> H2 = 16, H3 = 8
    batch = 8

    key = jax.random.PRNGKey(0)
    k_x, k_p = jax.random.split(key)

    x = jax.random.normal(k_x, (batch, input_dim), dtype=jnp.float32)
    params = init_params(k_p, input_dim)

    fwd = make_ae_forward(params)        # weights padded / cast exactly once
    enc, dec = fwd(x)
    enc = jax.block_until_ready(enc)
    dec = jax.block_until_ready(dec)

    assert enc.shape == (batch, input_dim // 4)
    assert dec.shape == (batch, input_dim)

    enc32 = enc.astype(jnp.float32)
    dec32 = dec.astype(jnp.float32)

    # Tight check vs. a reference doing the same bf16-operand matmuls
    # (kernel outputs are additionally bf16-quantized).
    enc_bf, dec_bf = ae_reference_bf16(x, params)
    assert jnp.allclose(enc32, enc_bf, atol=3e-2, rtol=3e-2)
    assert jnp.allclose(dec32, dec_bf, atol=3e-2, rtol=3e-2)

    # Loose semantic check vs. the full-f32 PyTorch-equivalent reference.
    enc_f32, dec_f32 = ae_reference_f32(x, params)
    assert jnp.allclose(enc32, enc_f32, atol=1e-1, rtol=1e-1)
    assert jnp.allclose(dec32, dec_f32, atol=1e-1, rtol=1e-1)

    print("KERNEL_OK")
</pallas_src>

<mosaic_0001>
module attributes {stable_mosaic.version = 11 : i64} {
  func.func @ae_kernel(%arg0: i32, %arg1: memref<8x128xbf16, #tpu.memory_space<vmem>>, %arg2: memref<128x128xbf16, #tpu.memory_space<vmem>>, %arg3: memref<1x128xf32, #tpu.memory_space<vmem>>, %arg4: memref<128x128xbf16, #tpu.memory_space<vmem>>, %arg5: memref<1x128xf32, #tpu.memory_space<vmem>>, %arg6: memref<128x128xbf16, #tpu.memory_space<vmem>>, %arg7: memref<1x128xf32, #tpu.memory_space<vmem>>, %arg8: memref<128x128xbf16, #tpu.memory_space<vmem>>, %arg9: memref<1x128xf32, #tpu.memory_space<vmem>>, %arg10: memref<8x128xbf16, #tpu.memory_space<vmem>>, %arg11: memref<8x128xbf16, #tpu.memory_space<vmem>>) attributes {dimension_semantics = [#tpu.dimension_semantics<parallel>], iteration_bounds = array<i64: 1>, scalar_prefetch = 0 : i64, scratch_operands = 0 : i64, tpu.core_type = #tpu.core_type<tc>, window_params = [{transform_indices = @transform_0, window_bounds = array<i64: 8, 128>}, {pipeline_mode = #tpu.pipeline_mode<synchronous>, transform_indices = @transform_1, window_bounds = array<i64: 128, 128>}, {pipeline_mode = #tpu.pipeline_mode<synchronous>, transform_indices = @transform_2, window_bounds = array<i64: 1, 128>}, {pipeline_mode = #tpu.pipeline_mode<synchronous>, transform_indices = @transform_3, window_bounds = array<i64: 128, 128>}, {pipeline_mode = #tpu.pipeline_mode<synchronous>, transform_indices = @transform_4, window_bounds = array<i64: 1, 128>}, {pipeline_mode = #tpu.pipeline_mode<synchronous>, transform_indices = @transform_5, window_bounds = array<i64: 128, 128>}, {pipeline_mode = #tpu.pipeline_mode<synchronous>, transform_indices = @transform_6, window_bounds = array<i64: 1, 128>}, {pipeline_mode = #tpu.pipeline_mode<synchronous>, transform_indices = @transform_7, window_bounds = array<i64: 128, 128>}, {pipeline_mode = #tpu.pipeline_mode<synchronous>, transform_indices = @transform_8, window_bounds = array<i64: 1, 128>}, {transform_indices = @transform_9, window_bounds = array<i64: 8, 128>}, {transform_indices = @transform_10, window_bounds = array<i64: 8, 128>}]} {
    %c0 = arith.constant 0 : index
    %c0_0 = arith.constant 0 : index
    %0 = vector.load %arg1[%c0, %c0_0] : memref<8x128xbf16, #tpu.memory_space<vmem>>, vector<8x128xbf16>
    %c0_1 = arith.constant 0 : index
    %c0_2 = arith.constant 0 : index
    %1 = vector.load %arg2[%c0_1, %c0_2] : memref<128x128xbf16, #tpu.memory_space<vmem>>, vector<128x128xbf16>
    %cst = arith.constant dense<0.000000e+00> : vector<8x128xf32>
    %2 = tpu.matmul %0, %1, %cst {dimension_numbers = #tpu.dot_dimension_numbers<[1], [0], [0], [1], [0, 0, 1, 1], [], []>} : vector<8x128xbf16>, vector<128x128xbf16>, vector<8x128xf32> -> vector<8x128xf32>
    %c0_3 = arith.constant 0 : index
    %c0_4 = arith.constant 0 : index
    %3 = vector.load %arg3[%c0_3, %c0_4] : memref<1x128xf32, #tpu.memory_space<vmem>>, vector<1x128xf32>
    %4 = vector.broadcast %3 : vector<1x128xf32> to vector<8x128xf32>
    %5 = arith.addf %2, %4 : vector<8x128xf32>
    %cst_5 = arith.constant 0.000000e+00 : f32
    %6 = vector.broadcast %cst_5 : f32 to vector<8x128xf32>
    %7 = arith.maximumf %5, %6 : vector<8x128xf32>
    %8 = arith.truncf %7 : vector<8x128xf32> to vector<8x128xbf16>
    %c0_6 = arith.constant 0 : index
    %c0_7 = arith.constant 0 : index
    %9 = vector.load %arg4[%c0_6, %c0_7] : memref<128x128xbf16, #tpu.memory_space<vmem>>, vector<128x128xbf16>
    %cst_8 = arith.constant dense<0.000000e+00> : vector<8x128xf32>
    %10 = tpu.matmul %8, %9, %cst_8 {dimension_numbers = #tpu.dot_dimension_numbers<[1], [0], [0], [1], [0, 0, 1, 1], [], []>} : vector<8x128xbf16>, vector<128x128xbf16>, vector<8x128xf32> -> vector<8x128xf32>
    %c0_9 = arith.constant 0 : index
    %c0_10 = arith.constant 0 : index
    %11 = vector.load %arg5[%c0_9, %c0_10] : memref<1x128xf32, #tpu.memory_space<vmem>>, vector<1x128xf32>
    %12 = vector.broadcast %11 : vector<1x128xf32> to vector<8x128xf32>
    %13 = arith.addf %10, %12 : vector<8x128xf32>
    %14 = arith.truncf %13 : vector<8x128xf32> to vector<8x128xbf16>
    %c0_11 = arith.constant 0 : index
    %c0_12 = arith.constant 0 : index
    %15 = vector.load %arg10[%c0_11, %c0_12] : memref<8x128xbf16, #tpu.memory_space<vmem>>, vector<8x128xbf16>
    tpu.vector_store %arg10[%c0_11, %c0_12], %14 {strides = array<i32>} : memref<8x128xbf16, #tpu.memory_space<vmem>>, vector<8x128xbf16>,
    %cst_13 = arith.constant 0.000000e+00 : f32
    %16 = vector.broadcast %cst_13 : f32 to vector<8x128xf32>
    %17 = arith.maximumf %13, %16 : vector<8x128xf32>
    %18 = arith.truncf %17 : vector<8x128xf32> to vector<8x128xbf16>
    %c0_14 = arith.constant 0 : index
    %c0_15 = arith.constant 0 : index
    %19 = vector.load %arg6[%c0_14, %c0_15] : memref<128x128xbf16, #tpu.memory_space<vmem>>, vector<128x128xbf16>
    %cst_16 = arith.constant dense<0.000000e+00> : vector<8x128xf32>
    %20 = tpu.matmul %18, %19, %cst_16 {dimension_numbers = #tpu.dot_dimension_numbers<[1], [0], [0], [1], [0, 0, 1, 1], [], []>} : vector<8x128xbf16>, vector<128x128xbf16>, vector<8x128xf32> -> vector<8x128xf32>
    %c0_17 = arith.constant 0 : index
    %c0_18 = arith.constant 0 : index
    %21 = vector.load %arg7[%c0_17, %c0_18] : memref<1x128xf32, #tpu.memory_space<vmem>>, vector<1x128xf32>
    %22 = vector.broadcast %21 : vector<1x128xf32> to vector<8x128xf32>
    %23 = arith.addf %20, %22 : vector<8x128xf32>
    %cst_19 = arith.constant 0.000000e+00 : f32
    %24 = vector.broadcast %cst_19 : f32 to vector<8x128xf32>
    %25 = arith.maximumf %23, %24 : vector<8x128xf32>
    %26 = arith.truncf %25 : vector<8x128xf32> to vector<8x128xbf16>
    %c0_20 = arith.constant 0 : index
    %c0_21 = arith.constant 0 : index
    %27 = vector.load %arg8[%c0_20, %c0_21] : memref<128x128xbf16, #tpu.memory_space<vmem>>, vector<128x128xbf16>
    %cst_22 = arith.constant dense<0.000000e+00> : vector<8x128xf32>
    %28 = tpu.matmul %26, %27, %cst_22 {dimension_numbers = #tpu.dot_dimension_numbers<[1], [0], [0], [1], [0, 0, 1, 1], [], []>} : vector<8x128xbf16>, vector<128x128xbf16>, vector<8x128xf32> -> vector<8x128xf32>
    %c0_23 = arith.constant 0 : index
    %c0_24 = arith.constant 0 : index
    %29 = vector.load %arg9[%c0_23, %c0_24] : memref<1x128xf32, #tpu.memory_space<vmem>>, vector<1x128xf32>
    %30 = vector.broadcast %29 : vector<1x128xf32> to vector<8x128xf32>
    %31 = arith.addf %28, %30 : vector<8x128xf32>
    %32 = arith.truncf %31 : vector<8x128xf32> to vector<8x128xbf16>
    %c0_25 = arith.constant 0 : index
    %c0_26 = arith.constant 0 : index
    %33 = vector.load %arg11[%c0_25, %c0_26] : memref<8x128xbf16, #tpu.memory_space<vmem>>, vector<8x128xbf16>
    tpu.vector_store %arg11[%c0_25, %c0_26], %32 {strides = array<i32>} : memref<8x128xbf16, #tpu.memory_space<vmem>>, vector<8x128xbf16>,
    return
  }
  func.func @transform_0(%arg0: i32) -> (i32, i32) {
    %c0_i32 = arith.constant 0 : i32
    %c0_i32_0 = arith.constant 0 : i32
    return %arg0, %c0_i32 : i32, i32
  }
  func.func @transform_1(%arg0: i32) -> (i32, i32) {
    %c0_i32 = arith.constant 0 : i32
    %c0_i32_0 = arith.constant 0 : i32
    %c0_i32_1 = arith.constant 0 : i32
    return %c0_i32, %c0_i32_0 : i32, i32
  }
  func.func @transform_2(%arg0: i32) -> (i32, i32) {
    %c0_i32 = arith.constant 0 : i32
    %c0_i32_0 = arith.constant 0 : i32
    %c0_i32_1 = arith.constant 0 : i32
    return %c0_i32, %c0_i32_0 : i32, i32
  }
  func.func @transform_3(%arg0: i32) -> (i32, i32) {
    %c0_i32 = arith.constant 0 : i32
    %c0_i32_0 = arith.constant 0 : i32
    %c0_i32_1 = arith.constant 0 : i32
    return %c0_i32, %c0_i32_0 : i32, i32
  }
  func.func @transform_4(%arg0: i32) -> (i32, i32) {
    %c0_i32 = arith.constant 0 : i32
    %c0_i32_0 = arith.constant 0 : i32
    %c0_i32_1 = arith.constant 0 : i32
    return %c0_i32, %c0_i32_0 : i32, i32
  }
  func.func @transform_5(%arg0: i32) -> (i32, i32) {
    %c0_i32 = arith.constant 0 : i32
    %c0_i32_0 = arith.constant 0 : i32
    %c0_i32_1 = arith.constant 0 : i32
    return %c0_i32, %c0_i32_0 : i32, i32
  }
  func.func @transform_6(%arg0: i32) -> (i32, i32) {
    %c0_i32 = arith.constant 0 : i32
    %c0_i32_0 = arith.constant 0 : i32
    %c0_i32_1 = arith.constant 0 : i32
    return %c0_i32, %c0_i32_0 : i32, i32
  }
  func.func @transform_7(%arg0: i32) -> (i32, i32) {
    %c0_i32 = arith.constant 0 : i32
    %c0_i32_0 = arith.constant 0 : i32
    %c0_i32_1 = arith.constant 0 : i32
    return %c0_i32, %c0_i32_0 : i32, i32
  }
  func.func @transform_8(%arg0: i32) -> (i32, i32) {
    %c0_i32 = arith.constant 0 : i32
    %c0_i32_0 = arith.constant 0 : i32
    %c0_i32_1 = arith.constant 0 : i32
    return %c0_i32, %c0_i32_0 : i32, i32
  }
  func.func @transform_9(%arg0: i32) -> (i32, i32) {
    %c0_i32 = arith.constant 0 : i32
    %c0_i32_0 = arith.constant 0 : i32
    return %arg0, %c0_i32 : i32, i32
  }
  func.func @transform_10(%arg0: i32) -> (i32, i32) {
    %c0_i32 = arith.constant 0 : i32
    %c0_i32_0 = arith.constant 0 : i32
    return %arg0, %c0_i32 : i32, i32
  }
}

</mosaic_0001>

<bundles_post_ra>
// kernel: fwd.1
= control target key start
LH: loop header
LB: loop body
LE: loop exit
PB: predicated region body
PF: predicated region fallthrough
CT: control target
= control target key end

     0   :  { %16 = vsyncpa [#allocation3], 0  ;;  %s1093_s0 = inlined_call_operand.vmem [shape: bf16[8,128], index: 0, kind: input, shape index: {}]   ;;  %s1094_s1 = inlined_call_operand.hbm [shape: bf16[128,128], index: 1, kind: input, shape index: {}]   ;;  %s1095_s2 = inlined_call_operand.vmem [shape: f32[1,128], index: 2, kind: input, shape index: {}]   ;;  %s1096_s3 = inlined_call_operand.hbm [shape: bf16[128,128], index: 3, kind: input, shape index: {}]   ;;  %s1097_s4 = inlined_call_operand.vmem [shape: f32[1,128], index: 4, kind: input, shape index: {}]   ;;  %s1098_s5 = inlined_call_operand.hbm [shape: bf16[128,128], index: 5, kind: input, shape index: {}]   ;;  %s1099_s6 = inlined_call_operand.vmem [shape: f32[1,128], index: 6, kind: input, shape index: {}]   ;;  %s1100_s7 = inlined_call_operand.vmem [shape: bf16[128,128], index: 7, kind: input, shape index: {}]   ;;  %s1101_s8 = inlined_call_operand.vmem [shape: f32[1,128], index: 8, kind: input, shape index: {}]   ;;  %s1102_s9 = inlined_call_operand.hbm [shape: bf16[8,128], index: 9, kind: output, shape index: {0}]   ;;  %s1103_s10 = inlined_call_operand.hbm [shape: bf16[8,128], index: 10, kind: output, shape index: {1}]  }
   0x1   :  { %17 = vsyncpa [#allocation6], 0 }
   0x2   :  { %18 = vsyncpa [#allocation4], 0 }
   0x3   :  { %19 = vsyncpa [#allocation10], 0  ;;  %s874_s13 = smov [#allocation5]   ;;  %s875_s15 = smov [#allocation2]  }
   0x4   :  { %s41_s14 = sshll.u32 %s874_s13, 4  ;;  %s27_s16 = sshll.u32 %s875_s15, 4  ;;  %s42_s14 = int_to_ptr.vmem [resolvable:$true] %s41_s14  ;;  %s938_s16 = int_to_ptr.vmem [resolvable:$true] %s27_s16 }
   0x5   :  { %s756_s19 = scalar_lea.hbm %s1096_s3, 1024 }
   0x6   :  { %p757_p0 = scmp.ne.s32.totalorder %s1096_s3, %s756_s19  ;;  %p760_p1 = scmp.lt.u32.totalorder %s756_s19, %s1096_s3 }
   0x8   :  { %p762_p2 = pnand %p760_p1, %p757_p0 }
   0xa   :  { %765 = shalt.err (!%p762_p2)
}
   0xb   :  { %s766_s24 = scalar_lea.vmem %s42_s14, 1024  ;;  %p771_p4 = scmp.lt.s32.totalorder %s42_s14, %s42_s14 }
   0xc   :  { %p767_p3 = scmp.ne.s32.totalorder %s42_s14, %s766_s24  ;;  %p772_p5 = scmp.lt.s32.totalorder %s766_s24, %s766_s24 }
   0xe   :  { %p773_p6 = por %p772_p5, %p771_p4 }
  0x10   :  { %p774_p7 = pnand %p773_p6, %p767_p3 }
  0x12   :  { %777 = shalt.err (!%p774_p7)
}
  0x13   :  { %s876_s25 = smov 64   ;;  %s877_s26 = smov 4  }
  0x14   :  { %47 = dma.hbm_to_vmem [thread:$0]  %s1096_s3, 1024, %s42_s14, [#allocation6], %s876_s25, %s876_s25, %s877_s26  }
  0x15   :  { %s778_s11 = scalar_lea.hbm %s1094_s1, 1024 }
  0x16   :  { %p779_p8 = scmp.ne.s32.totalorder %s1094_s1, %s778_s11  ;;  %p782_p9 = scmp.lt.u32.totalorder %s778_s11, %s1094_s1 }
  0x18   :  { %p784_p10 = pnand %p782_p9, %p779_p8 }
  0x1a   :  { %787 = shalt.err (!%p784_p10)
}
  0x1b   :  { %s788_s18 = scalar_lea.vmem %s938_s16, 1024  ;;  %p793_p12 = scmp.lt.s32.totalorder %s938_s16, %s938_s16 }
  0x1c   :  { %p789_p11 = scmp.ne.s32.totalorder %s938_s16, %s788_s18  ;;  %p794_p13 = scmp.lt.s32.totalorder %s788_s18, %s788_s18 }
  0x1e   :  { %p795_p0 = por %p794_p13, %p793_p12 }
  0x20   :  { %p796_p1 = pnand %p795_p0, %p789_p11 }
  0x22   :  { %799 = shalt.err (!%p796_p1)
}
  0x23   :  { %33 = dma.hbm_to_vmem [thread:$0]  %s1094_s1, 1024, %s938_s16, [#allocation3], %s876_s25, %s876_s25, %s877_s26  }
  0x24   :  { %s878_s19 = smov [#allocation7]   ;;  %s800_s23 = scalar_lea.hbm %s1098_s5, 1024 }
  0x25   :  { %s55_s20 = sshll.u32 %s878_s19, 4  ;;  %p801_p2 = scmp.ne.s32.totalorder %s1098_s5, %s800_s23  ;;  %s56_s20 = int_to_ptr.vmem [resolvable:$true] %s55_s20 }
  0x26   :  { %p804_p3 = scmp.lt.u32.totalorder %s800_s23, %s1098_s5 }
  0x28   :  { %p806_p4 = pnand %p804_p3, %p801_p2 }
  0x2a   :  { %809 = shalt.err (!%p806_p4)
}
  0x2b   :  { %s810_s30 = scalar_lea.vmem %s56_s20, 1024  ;;  %p815_p6 = scmp.lt.s32.totalorder %s56_s20, %s56_s20 }
  0x2c   :  { %p811_p5 = scmp.ne.s32.totalorder %s56_s20, %s810_s30  ;;  %p816_p7 = scmp.lt.s32.totalorder %s810_s30, %s810_s30 }
  0x2e   :  { %p817_p8 = por %p816_p7, %p815_p6 }
  0x30   :  { %p818_p9 = pnand %p817_p8, %p811_p5 }
  0x32   :  { %821 = shalt.err (!%p818_p9)
}
  0x33   :  { %61 = dma.hbm_to_vmem [thread:$0]  %s1098_s5, 1024, %s56_s20, [#allocation6], %s876_s25, %s876_s25, %s877_s26  }
  0x34   :  { %866 = dma.done.wait [#allocation3], 1024  }
  0x35   :  { %867 = vsyncadd [#allocation3], 4294966272 }
  0x36   :  { %868 = dma.done.wait [#allocation6], 2048  }
  0x37   :  { %869 = vsyncadd [#allocation6], 4294965248  ;;  %v879_v0 = vmov 0.0   ;;  %vm880_vm0 = vmmov 0   ;;  %v724_v1 = vld [vmem:[#allocation2] sm:$0xff]   ;;  %v725_v2 = vld [vmem:[#allocation2 + $0x8] sm:$0xff]  }
  0x38   :  { %635 = vmatprep.subr.bf16.mxu0 %v879_v0  ;;  %651 = vmatprep.mubr.msk.bf16.mxu0 %vm880_vm0, %v879_v0  ;;  %v726_v3 = vld [vmem:[#allocation2 + $0x10] sm:$0xff]   ;;  %v732_v4 = vld [vmem:[#allocation5] sm:$0xff]   ;;  %v727_v5 = vld [vmem:[#allocation2 + $0x18] sm:$0xff]   ;;  %s881_s1 = smov [#allocation8]  }
  0x39   :  { %655 = vmatprep.subr.bf16.mxu1 %v879_v0  ;;  %671 = vmatprep.mubr.msk.bf16.mxu1 %vm880_vm0, %v879_v0  ;;  %v733_v6 = vld [vmem:[#allocation5 + $0x8] sm:$0xff]   ;;  %v728_v7 = vld [vmem:[#allocation2 + $0x20] sm:$0xff]   ;;  %v734_v8 = vld [vmem:[#allocation5 + $0x10] sm:$0xff]   ;;  %s539_s16 = sshll.u32 %s881_s1, 4  ;;  %s540_s16 = int_to_ptr.vmem [resolvable:$true] %s539_s16 }
  0x3a   :  { %636 = vmatpush3.bf16.msra.mxu0 %v724_v1  ;;  %656 = vmatpush3.bf16.msra.mxu1 %v732_v4  ;;  %v729_v9 = vld [vmem:[#allocation2 + $0x28] sm:$0xff]   ;;  %v735_v10 = vld [vmem:[#allocation5 + $0x18] sm:$0xff]   ;;  %v730_v11 = vld [vmem:[#allocation2 + $0x30] sm:$0xff]   ;;  %s822_s5 = scalar_lea.vmem %s540_s16, 64  ;;  %p827_p11 = scmp.lt.s32.totalorder %s540_s16, %s540_s16 }
  0x3b   :  { %637 = vmatprep.subr.bf16.mxu0 %v879_v0  ;;  %657 = vmatprep.subr.bf16.mxu1 %v879_v0  ;;  %v736_v12 = vld [vmem:[#allocation5 + $0x20] sm:$0xff]   ;;  %v731_v13 = vld [vmem:[#allocation2 + $0x38] sm:$0xff]   ;;  %v737_v14 = vld [vmem:[#allocation5 + $0x28] sm:$0xff]   ;;  %p823_p10 = scmp.ne.s32.totalorder %s540_s16, %s822_s5  ;;  %p828_p12 = scmp.lt.s32.totalorder %s822_s5, %s822_s5 }
  0x3c   :  { %v78_v15 = vld [vmem:[%s1093_s0] sm:$0xf]  ;;  %v738_v16 = vld [vmem:[#allocation5 + $0x30] sm:$0xff]   ;;  %v739_v17 = vld [vmem:[#allocation5 + $0x38] sm:$0xff]  }
  0x3d   :  { %v740_v18 = vld [vmem:[#allocation7] sm:$0xff]   ;;  %v741_v19 = vld [vmem:[#allocation7 + $0x8] sm:$0xff]   ;;  %v742_v20 = vld [vmem:[#allocation7 + $0x10] sm:$0xff]   ;;  %p829_p13 = por %p828_p12, %p827_p11 }
  0x3e   :  { %638 = vmatpush3.bf16.msra.mxu0 %v725_v2  ;;  %658 = vmatpush3.bf16.msra.mxu1 %v733_v6  ;;  %v743_v21 = vld [vmem:[#allocation7 + $0x18] sm:$0xff]   ;;  %v744_v22 = vld [vmem:[#allocation7 + $0x20] sm:$0xff]   ;;  %v745_v23 = vld [vmem:[#allocation7 + $0x28] sm:$0xff]  }
  0x3f   :  { %639 = vmatprep.subr.bf16.mxu0 %v879_v0  ;;  %659 = vmatprep.subr.bf16.mxu1 %v879_v0  ;;  %v563_v24 = vld [vmem:[%s1095_s2] ss:$0 sm:$0xff]  ;;  %v746_v32 = vld [vmem:[#allocation7 + $0x30] sm:$0xff]   ;;  %v747_v33 = vld [vmem:[#allocation7 + $0x38] sm:$0xff]   ;;  %p830_p0 = pnand %p829_p13, %p823_p10 }
  0x40   :  { %v748_v34 = vld [vmem:[%s1100_s7] sm:$0xff]   ;;  %v749_v35 = vld [vmem:[%s1100_s7 + $0x8] sm:$0xff]   ;;  %v750_v36 = vld [vmem:[%s1100_s7 + $0x10] sm:$0xff]  }
  0x41   :  { %v751_v37 = vld [vmem:[%s1100_s7 + $0x18] sm:$0xff]   ;;  %v752_v38 = vld [vmem:[%s1100_s7 + $0x20] sm:$0xff]   ;;  %v753_v39 = vld [vmem:[%s1100_s7 + $0x28] sm:$0xff]  }
  0x42   :  { %640 = vmatpush3.bf16.msra.mxu0 %v726_v3  ;;  %660 = vmatpush3.bf16.msra.mxu1 %v734_v8  ;;  %v572_v40 = vld [vmem:[%s1097_s4] ss:$0 sm:$0xff]  ;;  %v754_v49 = vld [vmem:[%s1100_s7 + $0x30] sm:$0xff]   ;;  %v755_v50 = vld [vmem:[%s1100_s7 + $0x38] sm:$0xff]  }
  0x43   :  { %641 = vmatprep.subr.bf16.mxu0 %v879_v0  ;;  %661 = vmatprep.subr.bf16.mxu1 %v879_v0  ;;  %v581_v51 = vld [vmem:[%s1099_s6] ss:$0 sm:$0xff] }
  0x46   :  { %642 = vmatpush3.bf16.msra.mxu0 %v727_v5  ;;  %662 = vmatpush3.bf16.msra.mxu1 %v735_v10 }
  0x47   :  { %643 = vmatprep.subr.bf16.mxu0 %v879_v0  ;;  %663 = vmatprep.subr.bf16.mxu1 %v879_v0 }
  0x4a   :  { %644 = vmatpush3.bf16.msra.mxu0 %v728_v7  ;;  %664 = vmatpush3.bf16.msra.mxu1 %v736_v12 }
  0x4b   :  { %645 = vmatprep.subr.bf16.mxu0 %v879_v0  ;;  %665 = vmatprep.subr.bf16.mxu1 %v879_v0 }
  0x4e   :  { %646 = vmatpush3.bf16.msra.mxu0 %v729_v9  ;;  %666 = vmatpush3.bf16.msra.mxu1 %v737_v14 }
  0x4f   :  { %647 = vmatprep.subr.bf16.mxu0 %v879_v0  ;;  %667 = vmatprep.subr.bf16.mxu1 %v879_v0 }
  0x52   :  { %648 = vmatpush3.bf16.msra.mxu0 %v730_v11  ;;  %668 = vmatpush3.bf16.msra.mxu1 %v738_v16 }
  0x53   :  { %649 = vmatprep.subr.bf16.mxu0 %v879_v0  ;;  %669 = vmatprep.subr.bf16.mxu1 %v879_v0 }
  0x56   :  { %650 = vmatpush3.bf16.msra.mxu0 %v731_v13  ;;  %670 = vmatpush3.bf16.msra.mxu1 %v739_v17 }
  0x57   :  { %675 = vmatprep.subr.bf16.mxu0 %v879_v0  ;;  %695 = vmatprep.subr.bf16.mxu1 %v879_v0 }
  0x59   :  { %652 = vmatmul.mubr.bf16.vlgmr.msra.gmra.mrb[0].mxu0 %v78_v15 }
  0x5a   :  { %691 = vmatprep.mubr.msk.bf16.mxu0 %vm880_vm0, %v879_v0  ;;  %676 = vmatpush3.bf16.msra.mxu0 %v740_v18 }
  0x5b   :  { %677 = vmatprep.subr.bf16.mxu0 %v879_v0 }
  0x5e   :  { %678 = vmatpush3.bf16.msra.mxu0 %v741_v19 }
  0x5f   :  { %679 = vmatprep.subr.bf16.mxu0 %v879_v0 }
  0x62   :  { %680 = vmatpush3.bf16.msra.mxu0 %v742_v20 }
  0x63   :  { %681 = vmatprep.subr.bf16.mxu0 %v879_v0 }
  0x66   :  { %682 = vmatpush3.bf16.msra.mxu0 %v743_v21 }
  0x67   :  { %683 = vmatprep.subr.bf16.mxu0 %v879_v0 }
  0x6a   :  { %684 = vmatpush3.bf16.msra.mxu0 %v744_v22 }
  0x6b   :  { %685 = vmatprep.subr.bf16.mxu0 %v879_v0 }
  0x6e   :  { %686 = vmatpush3.bf16.msra.mxu0 %v745_v23 }
  0x6f   :  { %687 = vmatprep.subr.bf16.mxu0 %v879_v0 }
  0x72   :  { %688 = vmatpush3.bf16.msra.mxu0 %v746_v32 }
  0x73   :  { %689 = vmatprep.subr.bf16.mxu0 %v879_v0 }
  0x76   :  { %690 = vmatpush3.bf16.msra.mxu0 %v747_v33 }
 0x12c   :  { %v184_v25 = vpop.f32.mrb[0].mxu0 }
 0x12d   :  { %v185_v26 = vadd.f32 %v563_v24, %v184_v25  ;;  %v653_v27 = vpop.f32.mrb[1].mxu0 }
 0x12e   :  { %v187_v28 = vpop.f32.mrb[2].mxu0 }
 0x12f   :  { %v190_v29 = vmax.f32 %v185_v26, 0.0  ;;  %v654_v30 = vpop.f32.mrb[3].mxu0 }
 0x131   :  { %v191_v31 = vpack.c.bf16 %v190_v29, %v190_v29 }
 0x133   :  { %672 = vmatmul.mubr.bf16.vlgmr.msra.gmra.mrb[0].mxu1 %v191_v31 }
 0x134   :  { %711 = vmatprep.mubr.msk.bf16.mxu1 %vm880_vm0, %v879_v0  ;;  %696 = vmatpush3.bf16.msra.mxu1 %v748_v34 }
 0x135   :  { %697 = vmatprep.subr.bf16.mxu1 %v879_v0 }
 0x138   :  { %698 = vmatpush3.bf16.msra.mxu1 %v749_v35 }
 0x139   :  { %699 = vmatprep.subr.bf16.mxu1 %v879_v0 }
 0x13c   :  { %700 = vmatpush3.bf16.msra.mxu1 %v750_v36 }
 0x13d   :  { %701 = vmatprep.subr.bf16.mxu1 %v879_v0 }
 0x140   :  { %702 = vmatpush3.bf16.msra.mxu1 %v751_v37 }
 0x141   :  { %703 = vmatprep.subr.bf16.mxu1 %v879_v0 }
 0x144   :  { %704 = vmatpush3.bf16.msra.mxu1 %v752_v38 }
 0x145   :  { %705 = vmatprep.subr.bf16.mxu1 %v879_v0 }
 0x148   :  { %706 = vmatpush3.bf16.msra.mxu1 %v753_v39 }
 0x149   :  { %707 = vmatprep.subr.bf16.mxu1 %v879_v0 }
 0x14c   :  { %708 = vmatpush3.bf16.msra.mxu1 %v754_v49 }
 0x14d   :  { %709 = vmatprep.subr.bf16.mxu1 %v879_v0 }
 0x150   :  { %710 = vmatpush3.bf16.msra.mxu1 %v755_v50 }
 0x206   :  { %v297_v41 = vpop.f32.mrb[0].mxu1 }
 0x207   :  { %v298_v42 = vadd.f32 %v572_v40, %v297_v41  ;;  %v673_v43 = vpop.f32.mrb[1].mxu1 }
 0x208   :  { %v300_v44 = vpop.f32.mrb[2].mxu1 }
 0x209   :  { %v303_v45 = vpack.c.bf16 %v298_v42, %v298_v42  ;;  %v305_v46 = vmax.f32 %v298_v42, 0.0  ;;  %v674_v47 = vpop.f32.mrb[3].mxu1 }
 0x20b   :  { %v306_v48 = vpack.c.bf16 %v305_v46, %v305_v46  ;;  %304 = vst [vmem:[#allocation8] sm:$0xf] %v303_v45 }
 0x20d   :  { %692 = vmatmul.mubr.bf16.vlgmr.msra.gmra.mrb[4].mxu0 %v306_v48 }
 0x2e0   :  { %v412_v52 = vpop.f32.mrb[4].mxu0 }
 0x2e1   :  { %v413_v53 = vadd.f32 %v581_v51, %v412_v52  ;;  %v693_v54 = vpop.f32.mrb[5].mxu0 }
 0x2e2   :  { %v415_v55 = vpop.f32.mrb[6].mxu0 }
 0x2e3   :  { %v418_v56 = vmax.f32 %v413_v53, 0.0  ;;  %v694_v57 = vpop.f32.mrb[7].mxu0 }
 0x2e5   :  { %v419_v58 = vpack.c.bf16 %v418_v56, %v418_v56 }
 0x2e7   :  { %712 = vmatmul.mubr.bf16.vlgmr.msra.gmra.mrb[4].mxu1 %v419_v58 }
 0x2e8   :  { %833 = shalt.err (!%p830_p0)
}
 0x2e9   :  { %s834_s25 = scalar_lea.hbm %s1102_s9, 64 }
 0x2ea   :  { %p835_p1 = scmp.ne.s32.totalorder %s1102_s9, %s834_s25  ;;  %p838_p2 = scmp.lt.u32.totalorder %s834_s25, %s1102_s9 }
 0x2ec   :  { %p840_p3 = pnand %p838_p2, %p835_p1 }
 0x2ee   :  { %843 = shalt.err (!%p840_p3)
}
 0x2ef   :  { %542 = dma.vmem_to_hbm [thread:$0]  %s540_s16, 64, %s1102_s9, [#allocation4]   ;;  %v590_v59 = vld [vmem:[%s1101_s8] ss:$0 sm:$0xff] }
 0x2f0   :  { %s882_s18 = smov [#allocation9]  }
 0x2f1   :  { %s549_s3 = sshll.u32 %s882_s18, 4  ;;  %s550_s3 = int_to_ptr.vmem [resolvable:$true] %s549_s3 }
 0x2f2   :  { %s844_s14 = scalar_lea.vmem %s550_s3, 64  ;;  %p849_p5 = scmp.lt.s32.totalorder %s550_s3, %s550_s3 }
 0x2f3   :  { %p845_p4 = scmp.ne.s32.totalorder %s550_s3, %s844_s14  ;;  %p850_p6 = scmp.lt.s32.totalorder %s844_s14, %s844_s14 }
 0x2f5   :  { %p851_p7 = por %p850_p6, %p849_p5 }
 0x2f7   :  { %p852_p8 = pnand %p851_p7, %p845_p4 }
 0x3ba   :  { %v525_v60 = vpop.f32.mrb[4].mxu1 }
 0x3bb   :  { %v526_v61 = vadd.f32 %v590_v59, %v525_v60  ;;  %v713_v62 = vpop.f32.mrb[5].mxu1 }
 0x3bc   :  { %v528_v63 = vpop.f32.mrb[6].mxu1 }
 0x3bd   :  { %v531_v0 = vpack.c.bf16 %v526_v61, %v526_v61  ;;  %v714_v1 = vpop.f32.mrb[7].mxu1 }
 0x3bf   :  { %532 = vst [vmem:[#allocation9] sm:$0xf] %v531_v0 }
 0x3c0   :  { %855 = shalt.err (!%p852_p8)
}
 0x3c1   :  { %s856_s8 = scalar_lea.hbm %s1103_s10, 64 }
 0x3c2   :  { %p857_p9 = scmp.ne.s32.totalorder %s1103_s10, %s856_s8  ;;  %p860_p10 = scmp.lt.u32.totalorder %s856_s8, %s1103_s10 }
 0x3c4   :  { %p862_p11 = pnand %p860_p10, %p857_p9 }
 0x3c6   :  { %865 = shalt.err (!%p862_p11)
}
 0x3c7   :  { %552 = dma.vmem_to_hbm [thread:$0]  %s550_s3, 64, %s1103_s10, [#allocation10]  }
 0x3c8   :  { %870 = dma.done.wait [#allocation4], 64  }
 0x3c9   :  { %871 = vsyncadd [#allocation4], 4294967232 }
 0x3ca   :  { %872 = dma.done.wait [#allocation10], 64  }
 0x3cb   :  { %873 = vsyncadd [#allocation10], 4294967232 }
 0x3cc   :  { %559 = vsyncpa [#allocation3], 1 }
 0x3cd   :  { %560 = vsyncpa [#allocation6], 1 }
 0x3ce   :  { %561 = vsyncpa [#allocation4], 1 }
 0x3cf   :  { %562 = vsyncpa [#allocation10], 1 }

</bundles_post_ra>
